<compile_context>
chip_gen: v6e
topology: v6e:2x2x1
jax: 0.10.0
libtpu: 0.0.40
codegen_flags: <defaults>
</compile_context>

<pallas_src>
import jax
import jax.numpy as jnp
from jax.experimental import pallas as pl
from jax.experimental.pallas import tpu as pltpu


# ----------------------------------------------------------------------------
# Fused kernel: embedding MLP for x/y/z + pairwise L2 distances
# ----------------------------------------------------------------------------
def _tripletnet_kernel(x_ref, y_ref, z_ref, w1_ref, b1_ref, w2_ref, b2_ref,
                       ex_ref, ey_ref, ez_ref, dist_ref):
    bm = x_ref.shape[0]

    # --- Embedding MLP: run all three inputs through one matmul pass ---------
    xyz = jnp.concatenate([x_ref[...], y_ref[...], z_ref[...]], axis=0)  # (3*bm, D)
    h = jnp.dot(xyz, w1_ref[...], preferred_element_type=jnp.float32) + b1_ref[...]
    h = jnp.maximum(h, 0.0)
    emb = jnp.dot(h, w2_ref[...], preferred_element_type=jnp.float32) + b2_ref[...]

    ex = emb[:bm]
    ey = emb[bm:2 * bm]
    ez = emb[2 * bm:]
    ex_ref[...] = ex
    ey_ref[...] = ey
    ez_ref[...] = ez

    # --- Pairwise L2 distances (F.pairwise_distance, p=2, eps=1e-6) ----------
    eps = jnp.float32(1e-6)
    dxy = ex - ey + eps
    dxz = ex - ez + eps
    da = jnp.sqrt(jnp.sum(dxy * dxy, axis=-1, keepdims=True))  # (bm, 1)
    db = jnp.sqrt(jnp.sum(dxz * dxz, axis=-1, keepdims=True))  # (bm, 1)

    # Lane-dense store: broadcast across the 128-lane axis so the output write
    # is a full unmasked vreg store; the wrapper reads lane 0.
    lanes = dist_ref.shape[-1]
    dist_ref[0] = jnp.broadcast_to(da, (bm, lanes))
    dist_ref[1] = jnp.broadcast_to(db, (bm, lanes))


# ----------------------------------------------------------------------------
# Tripletnet forward (single pallas_call)
# ----------------------------------------------------------------------------
def tripletnet_forward(x, y, z, params, *, block_b=None):
    """x/y/z: [B, D] -> (dist_a [B], dist_b [B], ex [B,E], ey [B,E], ez [B,E])."""
    w1, b1, w2, b2 = params
    B, D = x.shape
    H = w1.shape[1]
    E = w2.shape[1]

    if block_b is None:
        block_b = min(B, 128)           # batch tile; weights stay resident
    grid = (pl.cdiv(B, block_b),)

    b1_2d = b1.reshape(1, H)
    b2_2d = b2.reshape(1, E)

    ex, ey, ez, dist = pl.pallas_call(
        _tripletnet_kernel,
        out_shape=(
            jax.ShapeDtypeStruct((B, E), jnp.float32),
            jax.ShapeDtypeStruct((B, E), jnp.float32),
            jax.ShapeDtypeStruct((B, E), jnp.float32),
            jax.ShapeDtypeStruct((2, B, 128), jnp.float32),   # lane-dense distances
        ),
        grid=grid,
        in_specs=[
            pl.BlockSpec((block_b, D), lambda i: (i, 0)),     # x tile
            pl.BlockSpec((block_b, D), lambda i: (i, 0)),     # y tile
            pl.BlockSpec((block_b, D), lambda i: (i, 0)),     # z tile
            pl.BlockSpec((D, H), lambda i: (0, 0)),           # W1 (resident)
            pl.BlockSpec((1, H), lambda i: (0, 0)),           # b1
            pl.BlockSpec((H, E), lambda i: (0, 0)),           # W2 (resident)
            pl.BlockSpec((1, E), lambda i: (0, 0)),           # b2
        ],
        out_specs=(
            pl.BlockSpec((block_b, E), lambda i: (i, 0)),
            pl.BlockSpec((block_b, E), lambda i: (i, 0)),
            pl.BlockSpec((block_b, E), lambda i: (i, 0)),
            pl.BlockSpec((2, block_b, 128), lambda i: (0, i, 0)),
        ),
        compiler_params=pltpu.CompilerParams(
            dimension_semantics=("parallel",),                # shards batch tiles on v7x
        ),
    )(x, y, z, w1, b1_2d, w2, b2_2d)

    dist_a = dist[0, :, 0]
    dist_b = dist[1, :, 0]
    return dist_a, dist_b, ex, ey, ez


if __name__ == "__main__":
    # Small deterministic problem: batch=8, input dim=128, hidden=128, embed=128.
    B, D, H, E = 8, 128, 128, 128
    key = jax.random.PRNGKey(0)
    kx, ky, kz, kw1, kb1, kw2, kb2 = jax.random.split(key, 7)

    x = jax.random.normal(kx, (B, D), dtype=jnp.float32)
    y = jax.random.normal(ky, (B, D), dtype=jnp.float32)
    z = jax.random.normal(kz, (B, D), dtype=jnp.float32)

    # Deterministic parameter init (synthetic embeddingnet weights).
    w1 = jax.random.normal(kw1, (D, H), dtype=jnp.float32) * (1.0 / jnp.sqrt(D))
    b1 = jax.random.normal(kb1, (H,), dtype=jnp.float32) * 0.01
    w2 = jax.random.normal(kw2, (H, E), dtype=jnp.float32) * (1.0 / jnp.sqrt(H))
    b2 = jax.random.normal(kb2, (E,), dtype=jnp.float32) * 0.01
    params = (w1, b1, w2, b2)

    dist_a, dist_b, ex, ey, ez = tripletnet_forward(x, y, z, params)
    jax.block_until_ready((dist_a, dist_b, ex, ey, ez))

    # Pure-JAX reference check.
    def ref_embed(v):
        return jnp.maximum(v @ w1 + b1, 0.0) @ w2 + b2

    rex, rey, rez = ref_embed(x), ref_embed(y), ref_embed(z)
    eps = 1e-6
    rda = jnp.sqrt(jnp.sum((rex - rey + eps) ** 2, axis=-1))
    rdb = jnp.sqrt(jnp.sum((rex - rez + eps) ** 2, axis=-1))

    assert jnp.allclose(ex, rex, atol=1e-4, rtol=1e-4)
    assert jnp.allclose(ey, rey, atol=1e-4, rtol=1e-4)
    assert jnp.allclose(ez, rez, atol=1e-4, rtol=1e-4)
    assert jnp.allclose(dist_a, rda, atol=1e-4, rtol=1e-4)
    assert jnp.allclose(dist_b, rdb, atol=1e-4, rtol=1e-4)
    assert dist_a.shape == (B,) and dist_b.shape == (B,)

    print("KERNEL_OK")
</pallas_src>

<mosaic_0001>
module attributes {stable_mosaic.version = 11 : i64} {
  func.func @_tripletnet_kernel(%arg0: i32, %arg1: memref<8x128xf32, #tpu.memory_space<vmem>>, %arg2: memref<8x128xf32, #tpu.memory_space<vmem>>, %arg3: memref<8x128xf32, #tpu.memory_space<vmem>>, %arg4: memref<128x128xf32, #tpu.memory_space<vmem>>, %arg5: memref<1x128xf32, #tpu.memory_space<vmem>>, %arg6: memref<128x128xf32, #tpu.memory_space<vmem>>, %arg7: memref<1x128xf32, #tpu.memory_space<vmem>>, %arg8: memref<8x128xf32, #tpu.memory_space<vmem>>, %arg9: memref<8x128xf32, #tpu.memory_space<vmem>>, %arg10: memref<8x128xf32, #tpu.memory_space<vmem>>, %arg11: memref<2x8x128xf32, #tpu.memory_space<vmem>>) attributes {dimension_semantics = [#tpu.dimension_semantics<parallel>], iteration_bounds = array<i64: 1>, scalar_prefetch = 0 : i64, scratch_operands = 0 : i64, tpu.core_type = #tpu.core_type<tc>, window_params = [{transform_indices = @transform_0, window_bounds = array<i64: 8, 128>}, {transform_indices = @transform_1, window_bounds = array<i64: 8, 128>}, {transform_indices = @transform_2, window_bounds = array<i64: 8, 128>}, {pipeline_mode = #tpu.pipeline_mode<synchronous>, transform_indices = @transform_3, window_bounds = array<i64: 128, 128>}, {pipeline_mode = #tpu.pipeline_mode<synchronous>, transform_indices = @transform_4, window_bounds = array<i64: 1, 128>}, {pipeline_mode = #tpu.pipeline_mode<synchronous>, transform_indices = @transform_5, window_bounds = array<i64: 128, 128>}, {pipeline_mode = #tpu.pipeline_mode<synchronous>, transform_indices = @transform_6, window_bounds = array<i64: 1, 128>}, {transform_indices = @transform_7, window_bounds = array<i64: 8, 128>}, {transform_indices = @transform_8, window_bounds = array<i64: 8, 128>}, {transform_indices = @transform_9, window_bounds = array<i64: 8, 128>}, {transform_indices = @transform_10, window_bounds = array<i64: 2, 8, 128>}]} {
    %c0 = arith.constant 0 : index
    %c0_0 = arith.constant 0 : index
    %0 = vector.load %arg1[%c0, %c0_0] : memref<8x128xf32, #tpu.memory_space<vmem>>, vector<8x128xf32>
    %c0_1 = arith.constant 0 : index
    %c0_2 = arith.constant 0 : index
    %1 = vector.load %arg2[%c0_1, %c0_2] : memref<8x128xf32, #tpu.memory_space<vmem>>, vector<8x128xf32>
    %c0_3 = arith.constant 0 : index
    %c0_4 = arith.constant 0 : index
    %2 = vector.load %arg3[%c0_3, %c0_4] : memref<8x128xf32, #tpu.memory_space<vmem>>, vector<8x128xf32>
    %3 = tpu.concatenate %0, %1, %2 in 0 : vector<8x128xf32>, vector<8x128xf32>, vector<8x128xf32> -> vector<24x128xf32>
    %c0_5 = arith.constant 0 : index
    %c0_6 = arith.constant 0 : index
    %4 = vector.load %arg4[%c0_5, %c0_6] : memref<128x128xf32, #tpu.memory_space<vmem>>, vector<128x128xf32>
    %cst = arith.constant dense<0.000000e+00> : vector<24x128xf32>
    %5 = tpu.matmul %3, %4, %cst {dimension_numbers = #tpu.dot_dimension_numbers<[1], [0], [0], [1], [0, 0, 1, 1], [], []>} : vector<24x128xf32>, vector<128x128xf32>, vector<24x128xf32> -> vector<24x128xf32>
    %c0_7 = arith.constant 0 : index
    %c0_8 = arith.constant 0 : index
    %6 = vector.load %arg5[%c0_7, %c0_8] : memref<1x128xf32, #tpu.memory_space<vmem>>, vector<1x128xf32>
    %7 = vector.broadcast %6 : vector<1x128xf32> to vector<24x128xf32>
    %8 = arith.addf %5, %7 : vector<24x128xf32>
    %cst_9 = arith.constant 0.000000e+00 : f32
    %9 = vector.broadcast %cst_9 : f32 to vector<24x128xf32>
    %10 = arith.maximumf %8, %9 : vector<24x128xf32>
    %c0_10 = arith.constant 0 : index
    %c0_11 = arith.constant 0 : index
    %11 = vector.load %arg6[%c0_10, %c0_11] : memref<128x128xf32, #tpu.memory_space<vmem>>, vector<128x128xf32>
    %cst_12 = arith.constant dense<0.000000e+00> : vector<24x128xf32>
    %12 = tpu.matmul %10, %11, %cst_12 {dimension_numbers = #tpu.dot_dimension_numbers<[1], [0], [0], [1], [0, 0, 1, 1], [], []>} : vector<24x128xf32>, vector<128x128xf32>, vector<24x128xf32> -> vector<24x128xf32>
    %c0_13 = arith.constant 0 : index
    %c0_14 = arith.constant 0 : index
    %13 = vector.load %arg7[%c0_13, %c0_14] : memref<1x128xf32, #tpu.memory_space<vmem>>, vector<1x128xf32>
    %14 = vector.broadcast %13 : vector<1x128xf32> to vector<24x128xf32>
    %15 = arith.addf %12, %14 : vector<24x128xf32>
    %16 = vector.extract_strided_slice %15 {offsets = [0, 0], sizes = [8, 128], strides = [1, 1]} : vector<24x128xf32> to vector<8x128xf32>
    %17 = vector.extract_strided_slice %15 {offsets = [8, 0], sizes = [8, 128], strides = [1, 1]} : vector<24x128xf32> to vector<8x128xf32>
    %18 = vector.extract_strided_slice %15 {offsets = [16, 0], sizes = [8, 128], strides = [1, 1]} : vector<24x128xf32> to vector<8x128xf32>
    %c0_15 = arith.constant 0 : index
    %c0_16 = arith.constant 0 : index
    %19 = vector.load %arg8[%c0_15, %c0_16] : memref<8x128xf32, #tpu.memory_space<vmem>>, vector<8x128xf32>
    tpu.vector_store %arg8[%c0_15, %c0_16], %16 {strides = array<i32>} : memref<8x128xf32, #tpu.memory_space<vmem>>, vector<8x128xf32>,
    %c0_17 = arith.constant 0 : index
    %c0_18 = arith.constant 0 : index
    %20 = vector.load %arg9[%c0_17, %c0_18] : memref<8x128xf32, #tpu.memory_space<vmem>>, vector<8x128xf32>
    tpu.vector_store %arg9[%c0_17, %c0_18], %17 {strides = array<i32>} : memref<8x128xf32, #tpu.memory_space<vmem>>, vector<8x128xf32>,
    %c0_19 = arith.constant 0 : index
    %c0_20 = arith.constant 0 : index
    %21 = vector.load %arg10[%c0_19, %c0_20] : memref<8x128xf32, #tpu.memory_space<vmem>>, vector<8x128xf32>
    tpu.vector_store %arg10[%c0_19, %c0_20], %18 {strides = array<i32>} : memref<8x128xf32, #tpu.memory_space<vmem>>, vector<8x128xf32>,
    %22 = arith.subf %16, %17 : vector<8x128xf32>
    %cst_21 = arith.constant 9.99999997E-7 : f32
    %23 = vector.broadcast %cst_21 : f32 to vector<8x128xf32>
    %24 = arith.addf %22, %23 : vector<8x128xf32>
    %25 = arith.subf %16, %18 : vector<8x128xf32>
    %cst_22 = arith.constant 9.99999997E-7 : f32
    %26 = vector.broadcast %cst_22 : f32 to vector<8x128xf32>
    %27 = arith.addf %25, %26 : vector<8x128xf32>
    %28 = arith.mulf %24, %24 : vector<8x128xf32>
    %cst_23 = arith.constant dense<0.000000e+00> : vector<8xf32>
    %29 = vector.multi_reduction <add>, %28, %cst_23 [1] : vector<8x128xf32> to vector<8xf32>
    %30 = vector.shape_cast %29 : vector<8xf32> to vector<8x1xf32>
    %31 = math.sqrt %30 : vector<8x1xf32>
    %32 = arith.mulf %27, %27 : vector<8x128xf32>
    %cst_24 = arith.constant dense<0.000000e+00> : vector<8xf32>
    %33 = vector.multi_reduction <add>, %32, %cst_24 [1] : vector<8x128xf32> to vector<8xf32>
    %34 = vector.shape_cast %33 : vector<8xf32> to vector<8x1xf32>
    %35 = math.sqrt %34 : vector<8x1xf32>
    %36 = vector.shape_cast %31 : vector<8x1xf32> to vector<8x1xf32>
    %37 = vector.broadcast %36 : vector<8x1xf32> to vector<8x128xf32>
    %c0_25 = arith.constant 0 : index
    %c0_26 = arith.constant 0 : index
    %c0_27 = arith.constant 0 : index
    %38 = vector.load %arg11[%c0_25, %c0_26, %c0_27] : memref<2x8x128xf32, #tpu.memory_space<vmem>>, vector<1x8x128xf32>
    %39 = vector.shape_cast %38 : vector<1x8x128xf32> to vector<8x128xf32>
    %40 = vector.shape_cast %37 : vector<8x128xf32> to vector<1x8x128xf32>
    tpu.vector_store %arg11[%c0_25, %c0_26, %c0_27], %40 {strides = array<i32>} : memref<2x8x128xf32, #tpu.memory_space<vmem>>, vector<1x8x128xf32>,
    %41 = vector.shape_cast %35 : vector<8x1xf32> to vector<8x1xf32>
    %42 = vector.broadcast %41 : vector<8x1xf32> to vector<8x128xf32>
    %c1 = arith.constant 1 : index
    %c0_28 = arith.constant 0 : index
    %c0_29 = arith.constant 0 : index
    %43 = vector.load %arg11[%c1, %c0_28, %c0_29] : memref<2x8x128xf32, #tpu.memory_space<vmem>>, vector<1x8x128xf32>
    %44 = vector.shape_cast %43 : vector<1x8x128xf32> to vector<8x128xf32>
    %45 = vector.shape_cast %42 : vector<8x128xf32> to vector<1x8x128xf32>
    tpu.vector_store %arg11[%c1, %c0_28, %c0_29], %45 {strides = array<i32>} : memref<2x8x128xf32, #tpu.memory_space<vmem>>, vector<1x8x128xf32>,
    return
  }
  func.func @transform_0(%arg0: i32) -> (i32, i32) {
    %c0_i32 = arith.constant 0 : i32
    %c0_i32_0 = arith.constant 0 : i32
    return %arg0, %c0_i32 : i32, i32
  }
  func.func @transform_1(%arg0: i32) -> (i32, i32) {
    %c0_i32 = arith.constant 0 : i32
    %c0_i32_0 = arith.constant 0 : i32
    return %arg0, %c0_i32 : i32, i32
  }
  func.func @transform_2(%arg0: i32) -> (i32, i32) {
    %c0_i32 = arith.constant 0 : i32
    %c0_i32_0 = arith.constant 0 : i32
    return %arg0, %c0_i32 : i32, i32
  }
  func.func @transform_3(%arg0: i32) -> (i32, i32) {
    %c0_i32 = arith.constant 0 : i32
    %c0_i32_0 = arith.constant 0 : i32
    %c0_i32_1 = arith.constant 0 : i32
    return %c0_i32, %c0_i32_0 : i32, i32
  }
  func.func @transform_4(%arg0: i32) -> (i32, i32) {
    %c0_i32 = arith.constant 0 : i32
    %c0_i32_0 = arith.constant 0 : i32
    %c0_i32_1 = arith.constant 0 : i32
    return %c0_i32, %c0_i32_0 : i32, i32
  }
  func.func @transform_5(%arg0: i32) -> (i32, i32) {
    %c0_i32 = arith.constant 0 : i32
    %c0_i32_0 = arith.constant 0 : i32
    %c0_i32_1 = arith.constant 0 : i32
    return %c0_i32, %c0_i32_0 : i32, i32
  }
  func.func @transform_6(%arg0: i32) -> (i32, i32) {
    %c0_i32 = arith.constant 0 : i32
    %c0_i32_0 = arith.constant 0 : i32
    %c0_i32_1 = arith.constant 0 : i32
    return %c0_i32, %c0_i32_0 : i32, i32
  }
  func.func @transform_7(%arg0: i32) -> (i32, i32) {
    %c0_i32 = arith.constant 0 : i32
    %c0_i32_0 = arith.constant 0 : i32
    return %arg0, %c0_i32 : i32, i32
  }
  func.func @transform_8(%arg0: i32) -> (i32, i32) {
    %c0_i32 = arith.constant 0 : i32
    %c0_i32_0 = arith.constant 0 : i32
    return %arg0, %c0_i32 : i32, i32
  }
  func.func @transform_9(%arg0: i32) -> (i32, i32) {
    %c0_i32 = arith.constant 0 : i32
    %c0_i32_0 = arith.constant 0 : i32
    return %arg0, %c0_i32 : i32, i32
  }
  func.func @transform_10(%arg0: i32) -> (i32, i32, i32) {
    %c0_i32 = arith.constant 0 : i32
    %c0_i32_0 = arith.constant 0 : i32
    %c0_i32_1 = arith.constant 0 : i32
    return %c0_i32, %arg0, %c0_i32_0 : i32, i32, i32
  }
}

</mosaic_0001>

<bundles_post_ra>
// kernel: tpu_custom_call.1
= control target key start
LH: loop header
LB: loop body
LE: loop exit
PB: predicated region body
PF: predicated region fallthrough
CT: control target
= control target key end

     0   :  { %16 = vsyncpa [#allocation3], 0  ;;  %s882_s0 = inlined_call_operand.hbm [shape: f32[8,128], index: 0, kind: input, shape index: {}]   ;;  %s883_s1 = inlined_call_operand.hbm [shape: f32[8,128], index: 1, kind: input, shape index: {}]   ;;  %s884_s2 = inlined_call_operand.hbm [shape: f32[8,128], index: 2, kind: input, shape index: {}]   ;;  %s885_s3 = inlined_call_operand.hbm [shape: f32[128,128], index: 3, kind: input, shape index: {}]   ;;  %s886_s4 = inlined_call_operand.vmem [shape: f32[1,128], index: 4, kind: input, shape index: {}]   ;;  %s887_s5 = inlined_call_operand.hbm [shape: f32[128,128], index: 5, kind: input, shape index: {}]   ;;  %s888_s6 = inlined_call_operand.vmem [shape: f32[1,128], index: 6, kind: input, shape index: {}]   ;;  %s889_s7 = inlined_call_operand.hbm [shape: f32[8,128], index: 7, kind: output, shape index: {0}]   ;;  %s890_s8 = inlined_call_operand.hbm [shape: f32[8,128], index: 8, kind: output, shape index: {1}]   ;;  %s891_s9 = inlined_call_operand.hbm [shape: f32[8,128], index: 9, kind: output, shape index: {2}]   ;;  %s892_s10 = inlined_call_operand.hbm [shape: f32[2,8,128], index: 10, kind: output, shape index: {3}]  }
   0x1   :  { %17 = vsyncpa [#allocation6], 0 }
   0x2   :  { %18 = vsyncpa [#allocation9], 0 }
   0x3   :  { %19 = vsyncpa [#allocation4], 0 }
   0x4   :  { %20 = vsyncpa [#allocation13], 0 }
   0x5   :  { %21 = vsyncpa [#allocation16], 0  ;;  %s728_s13 = smov [#allocation5]   ;;  %s729_s15 = smov [#allocation8]  }
   0x6   :  { %s38_s14 = sshll.u32 %s728_s13, 4  ;;  %s57_s16 = sshll.u32 %s729_s15, 4  ;;  %s39_s14 = int_to_ptr.vmem [resolvable:$true] %s38_s14  ;;  %s58_s16 = int_to_ptr.vmem [resolvable:$true] %s57_s16 }
   0x7   :  { %s544_s17 = scalar_lea.vmem %s39_s14, 128  ;;  %p549_p1 = scmp.lt.s32.totalorder %s39_s14, %s39_s14 }
   0x8   :  { %p545_p0 = scmp.ne.s32.totalorder %s39_s14, %s544_s17  ;;  %p550_p2 = scmp.lt.s32.totalorder %s544_s17, %s544_s17 }
   0xa   :  { %p551_p3 = por %p550_p2, %p549_p1 }
   0xc   :  { %p552_p4 = pnand %p551_p3, %p545_p0 }
   0xe   :  { %555 = shalt.err (!%p552_p4)
}
   0xf   :  { %41 = dma.hbm_to_vmem [thread:$0]  %s883_s1, 128, %s39_s14, [#allocation6]  }
  0x10   :  { %s564_s20 = scalar_lea.vmem %s58_s16, 2048  ;;  %p569_p6 = scmp.lt.s32.totalorder %s58_s16, %s58_s16 }
  0x11   :  { %p565_p5 = scmp.ne.s32.totalorder %s58_s16, %s564_s20  ;;  %p570_p7 = scmp.lt.s32.totalorder %s564_s20, %s564_s20 }
  0x13   :  { %p571_p8 = por %p570_p7, %p569_p6 }
  0x15   :  { %p572_p9 = pnand %p571_p8, %p565_p5 }
  0x17   :  { %575 = shalt.err (!%p572_p9)
}
  0x18   :  { %s730_s21 = smov 128   ;;  %s731_s22 = smov 8  }
  0x19   :  { %63 = dma.hbm_to_vmem [thread:$0]  %s885_s3, 2048, %s58_s16, [#allocation9], %s730_s21, %s730_s21, %s731_s22  }
  0x1a   :  { %s732_s25 = smov [#allocation2]   ;;  %s733_s27 = smov [#allocation7]  }
  0x1b   :  { %s28_s26 = sshll.u32 %s732_s25, 4  ;;  %s48_s1 = sshll.u32 %s733_s27, 4  ;;  %s29_s26 = int_to_ptr.vmem [resolvable:$true] %s28_s26  ;;  %s49_s1 = int_to_ptr.vmem [resolvable:$true] %s48_s1 }
  0x1c   :  { %s584_s28 = scalar_lea.vmem %s29_s26, 128  ;;  %p589_p11 = scmp.lt.s32.totalorder %s29_s26, %s29_s26 }
  0x1d   :  { %p585_p10 = scmp.ne.s32.totalorder %s29_s26, %s584_s28  ;;  %p590_p12 = scmp.lt.s32.totalorder %s584_s28, %s584_s28 }
  0x1f   :  { %p591_p13 = por %p590_p12, %p589_p11 }
  0x21   :  { %p592_p0 = pnand %p591_p13, %p585_p10 }
  0x23   :  { %595 = shalt.err (!%p592_p0)
}
  0x24   :  { %31 = dma.hbm_to_vmem [thread:$0]  %s882_s0, 128, %s29_s26, [#allocation3]  }
  0x25   :  { %s604_s11 = scalar_lea.vmem %s49_s1, 128  ;;  %p609_p2 = scmp.lt.s32.totalorder %s49_s1, %s49_s1 }
  0x26   :  { %p605_p1 = scmp.ne.s32.totalorder %s49_s1, %s604_s11  ;;  %p610_p3 = scmp.lt.s32.totalorder %s604_s11, %s604_s11 }
  0x28   :  { %p611_p4 = por %p610_p3, %p609_p2 }
  0x2a   :  { %p612_p5 = pnand %p611_p4, %p605_p1 }
  0x2c   :  { %615 = shalt.err (!%p612_p5)
}
  0x2d   :  { %51 = dma.hbm_to_vmem [thread:$0]  %s884_s2, 128, %s49_s1, [#allocation6]  }
  0x2e   :  { %s734_s13 = smov [#allocation10]  }
  0x2f   :  { %s71_s14 = sshll.u32 %s734_s13, 4  ;;  %s72_s14 = int_to_ptr.vmem [resolvable:$true] %s71_s14 }
  0x30   :  { %s624_s15 = scalar_lea.vmem %s72_s14, 2048  ;;  %p629_p7 = scmp.lt.s32.totalorder %s72_s14, %s72_s14 }
  0x31   :  { %p625_p6 = scmp.ne.s32.totalorder %s72_s14, %s624_s15  ;;  %p630_p8 = scmp.lt.s32.totalorder %s624_s15, %s624_s15 }
  0x33   :  { %p631_p9 = por %p630_p8, %p629_p7 }
  0x35   :  { %p632_p10 = pnand %p631_p9, %p625_p6 }
  0x37   :  { %635 = shalt.err (!%p632_p10)
}
  0x38   :  { %77 = dma.hbm_to_vmem [thread:$0]  %s887_s5, 2048, %s72_s14, [#allocation9], %s730_s21, %s730_s21, %s731_s22  }
  0x39   :  { %716 = dma.done.wait [#allocation3], 128  }
  0x3a   :  { %717 = vsyncadd [#allocation3], 4294967168 }
  0x3b   :  { %718 = dma.done.wait [#allocation6], 256  }
  0x3c   :  { %719 = vsyncadd [#allocation6], 4294967040 }
  0x3d   :  { %720 = dma.done.wait [#allocation9], 4096  }
  0x3e   :  { %721 = vsyncadd [#allocation9], 4294963200  ;;  %v735_v0 = vmov 0.0   ;;  %vm736_vm0 = vmmov 0   ;;  %v113_v1 = vld [vmem:[#allocation8 + $0x78] sm:$0xff]  ;;  %v112_v2 = vld [vmem:[#allocation8 + $0x70] sm:$0xff] }
  0x3f   :  { %437 = vmatprep.subr.mxu0 %v735_v0  ;;  %469 = vmatprep.mubr.msk.f32.mxu0 %vm736_vm0, %v735_v0  ;;  %v111_v3 = vld [vmem:[#allocation8 + $0x68] sm:$0xff]  ;;  %v110_v4 = vld [vmem:[#allocation8 + $0x60] sm:$0xff]  ;;  %v109_v5 = vld [vmem:[#allocation8 + $0x58] sm:$0xff]  ;;  %s738_s19 = smov [#allocation11]  }
  0x40   :  { %478 = vmatprep.subr.mxu1 %v735_v0  ;;  %510 = vmatprep.mubr.msk.f32.mxu1 %vm736_vm0, %v735_v0  ;;  %v219_v6 = vld [vmem:[#allocation10 + $0x78] sm:$0xff]  ;;  %v218_v7 = vld [vmem:[#allocation10 + $0x70] sm:$0xff]  ;;  %v217_v9 = vld [vmem:[#allocation10 + $0x68] sm:$0xff]  ;;  %s343_s20 = sshll.u32 %s738_s19, 4  ;;  %s344_s20 = int_to_ptr.vmem [resolvable:$true] %s343_s20 }
  0x41   :  { %438 = vmatpush3.msra.mxu0 %v113_v1  ;;  %479 = vmatpush3.msra.mxu1 %v219_v6  ;;  %v108_v8 = vld [vmem:[#allocation8 + $0x50] sm:$0xff]  ;;  %v107_v10 = vld [vmem:[#allocation8 + $0x48] sm:$0xff]  ;;  %v216_v11 = vld [vmem:[#allocation10 + $0x60] sm:$0xff] }
  0x42   :  { %439 = vmatprep.subr.mxu0 %v735_v0  ;;  %480 = vmatprep.subr.mxu1 %v735_v0  ;;  %v106_v12 = vld [vmem:[#allocation8 + $0x40] sm:$0xff]  ;;  %v215_v13 = vld [vmem:[#allocation10 + $0x58] sm:$0xff]  ;;  %v214_v15 = vld [vmem:[#allocation10 + $0x50] sm:$0xff] }
  0x43   :  { %440 = vmatpush3.msra.mxu0 %v112_v2  ;;  %481 = vmatpush3.msra.mxu1 %v218_v7  ;;  %v105_v14 = vld [vmem:[#allocation8 + $0x38] sm:$0xff]  ;;  %v104_v16 = vld [vmem:[#allocation8 + $0x30] sm:$0xff]  ;;  %v213_v17 = vld [vmem:[#allocation10 + $0x48] sm:$0xff] }
  0x44   :  { %441 = vmatprep.subr.mxu0 %v735_v0  ;;  %482 = vmatprep.subr.mxu1 %v735_v0  ;;  %v103_v18 = vld [vmem:[#allocation8 + $0x28] sm:$0xff]  ;;  %v212_v19 = vld [vmem:[#allocation10 + $0x40] sm:$0xff]  ;;  %v211_v21 = vld [vmem:[#allocation10 + $0x38] sm:$0xff] }
  0x45   :  { %442 = vmatpush3.msra.mxu0 %v111_v3  ;;  %483 = vmatpush3.msra.mxu1 %v217_v9  ;;  %v102_v20 = vld [vmem:[#allocation8 + $0x20] sm:$0xff]  ;;  %v101_v22 = vld [vmem:[#allocation8 + $0x18] sm:$0xff]  ;;  %v210_v23 = vld [vmem:[#allocation10 + $0x30] sm:$0xff] }
  0x46   :  { %443 = vmatprep.subr.mxu0 %v735_v0  ;;  %484 = vmatprep.subr.mxu1 %v735_v0  ;;  %v100_v24 = vld [vmem:[#allocation8 + $0x10] sm:$0xff]  ;;  %v209_v25 = vld [vmem:[#allocation10 + $0x28] sm:$0xff]  ;;  %v208_v27 = vld [vmem:[#allocation10 + $0x20] sm:$0xff] }
  0x47   :  { %444 = vmatpush3.msra.mxu0 %v110_v4  ;;  %485 = vmatpush3.msra.mxu1 %v216_v11  ;;  %v99_v26 = vld [vmem:[#allocation8 + $0x8] sm:$0xff]  ;;  %v98_v28 = vld [vmem:[#allocation8] sm:$0xff]  ;;  %v207_v29 = vld [vmem:[#allocation10 + $0x18] sm:$0xff] }
  0x48   :  { %445 = vmatprep.subr.mxu0 %v735_v0  ;;  %486 = vmatprep.subr.mxu1 %v735_v0  ;;  %v95_v30 = vld [vmem:[#allocation2] sm:$0xff]  ;;  %v96_v31 = vld [vmem:[#allocation5] sm:$0xff]  ;;  %v97_v32 = vld [vmem:[#allocation7] sm:$0xff] }
  0x49   :  { %446 = vmatpush3.msra.mxu0 %v109_v5  ;;  %487 = vmatpush3.msra.mxu1 %v215_v13  ;;  %v206_v33 = vld [vmem:[#allocation10 + $0x10] sm:$0xff]  ;;  %v205_v34 = vld [vmem:[#allocation10 + $0x8] sm:$0xff]  ;;  %v204_v35 = vld [vmem:[#allocation10] sm:$0xff] }
  0x4a   :  { %447 = vmatprep.subr.mxu0 %v735_v0  ;;  %488 = vmatprep.subr.mxu1 %v735_v0  ;;  %v397_v36 = vld [vmem:[%s886_s4] ss:$0 sm:$0xff] }
  0x4b   :  { %448 = vmatpush3.msra.mxu0 %v108_v8  ;;  %489 = vmatpush3.msra.mxu1 %v214_v15  ;;  %v398_v49 = vld [vmem:[%s888_s6] ss:$0 sm:$0xff]  ;;  %s737_s6 = smov [#allocation12]  }
  0x4c   :  { %449 = vmatprep.subr.mxu0 %v735_v0  ;;  %490 = vmatprep.subr.mxu1 %v735_v0  ;;  %s353_s18 = sshll.u32 %s737_s6, 4  ;;  %s354_s18 = int_to_ptr.vmem [resolvable:$true] %s353_s18 }
  0x4d   :  { %450 = vmatpush3.msra.mxu0 %v107_v10  ;;  %491 = vmatpush3.msra.mxu1 %v213_v17  ;;  %s636_s23 = scalar_lea.vmem %s354_s18, 128  ;;  %p641_p12 = scmp.lt.s32.totalorder %s354_s18, %s354_s18 }
  0x4e   :  { %451 = vmatprep.subr.mxu0 %v735_v0  ;;  %492 = vmatprep.subr.mxu1 %v735_v0  ;;  %p637_p11 = scmp.ne.s32.totalorder %s354_s18, %s636_s23  ;;  %p642_p13 = scmp.lt.s32.totalorder %s636_s23, %s636_s23 }
  0x4f   :  { %452 = vmatpush3.msra.mxu0 %v106_v12  ;;  %493 = vmatpush3.msra.mxu1 %v212_v19 }
  0x50   :  { %453 = vmatprep.subr.mxu0 %v735_v0  ;;  %494 = vmatprep.subr.mxu1 %v735_v0  ;;  %p643_p0 = por %p642_p13, %p641_p12 }
  0x51   :  { %454 = vmatpush3.msra.mxu0 %v105_v14  ;;  %495 = vmatpush3.msra.mxu1 %v211_v21 }
  0x52   :  { %455 = vmatprep.subr.mxu0 %v735_v0  ;;  %496 = vmatprep.subr.mxu1 %v735_v0  ;;  %p644_p1 = pnand %p643_p0, %p637_p11 }
  0x53   :  { %456 = vmatpush3.msra.mxu0 %v104_v16  ;;  %497 = vmatpush3.msra.mxu1 %v210_v23 }
  0x54   :  { %457 = vmatprep.subr.mxu0 %v735_v0  ;;  %498 = vmatprep.subr.mxu1 %v735_v0 }
  0x55   :  { %458 = vmatpush3.msra.mxu0 %v103_v18  ;;  %499 = vmatpush3.msra.mxu1 %v209_v25 }
  0x56   :  { %459 = vmatprep.subr.mxu0 %v735_v0  ;;  %500 = vmatprep.subr.mxu1 %v735_v0 }
  0x57   :  { %460 = vmatpush3.msra.mxu0 %v102_v20  ;;  %501 = vmatpush3.msra.mxu1 %v208_v27 }
  0x58   :  { %461 = vmatprep.subr.mxu0 %v735_v0  ;;  %502 = vmatprep.subr.mxu1 %v735_v0 }
  0x59   :  { %462 = vmatpush3.msra.mxu0 %v101_v22  ;;  %503 = vmatpush3.msra.mxu1 %v207_v29 }
  0x5a   :  { %463 = vmatprep.subr.mxu0 %v735_v0  ;;  %504 = vmatprep.subr.mxu1 %v735_v0 }
  0x5b   :  { %464 = vmatpush3.msra.mxu0 %v100_v24  ;;  %505 = vmatpush3.msra.mxu1 %v206_v33 }
  0x5c   :  { %465 = vmatprep.subr.mxu0 %v735_v0  ;;  %506 = vmatprep.subr.mxu1 %v735_v0 }
  0x5d   :  { %466 = vmatpush3.msra.mxu0 %v99_v26  ;;  %507 = vmatpush3.msra.mxu1 %v205_v34 }
  0x5e   :  { %467 = vmatprep.subr.mxu0 %v735_v0  ;;  %508 = vmatprep.subr.mxu1 %v735_v0 }
  0x5f   :  { %468 = vmatpush3.msra.mxu0 %v98_v28  ;;  %509 = vmatpush3.msra.mxu1 %v204_v35 }
  0x60   :  { %470 = vmatmul.mubr.f32.vlgmr.msra.gmra.mxu0 %v95_v30 }
  0x61   :  { %472 = vmatprep.mubr.msk.f32.mxu0 %vm736_vm0, %v735_v0 }
  0x64   :  { %473 = vmatmul.mubr.f32.gmra.mxu0 %v96_v31 }
  0x65   :  { %475 = vmatprep.mubr.msk.f32.mxu0 %vm736_vm0, %v735_v0 }
  0x68   :  { %476 = vmatmul.mubr.f32.gmra.mxu0 %v97_v32 }
 0x120   :  { %v187_v37 = vpop.f32.mrf.mxu0 }
 0x121   :  { %v188_v38 = vadd.f32 %v397_v36, %v187_v37 }
 0x122   :  { %v471_v39 = vpop.f32.mrf.mxu0 }
 0x123   :  { %v201_v40 = vmax.f32 %v188_v38, 0.0 }
 0x124   :  { %v192_v41 = vpop.f32.mrf.mxu0 }
 0x125   :  { %v193_v42 = vadd.f32 %v397_v36, %v192_v41  ;;  %511 = vmatmul.mubr.f32.vlgmr.msra.gmra.mxu1 %v201_v40 }
 0x126   :  { %v474_v43 = vpop.f32.mrf.mxu0  ;;  %513 = vmatprep.mubr.msk.f32.mxu1 %vm736_vm0, %v735_v0 }
 0x127   :  { %v202_v44 = vmax.f32 %v193_v42, 0.0 }
 0x128   :  { %v197_v45 = vpop.f32.mrf.mxu0 }
 0x129   :  { %v198_v46 = vadd.f32 %v397_v36, %v197_v45  ;;  %514 = vmatmul.mubr.f32.gmra.mxu1 %v202_v44 }
 0x12a   :  { %v477_v47 = vpop.f32.mrf.mxu0  ;;  %516 = vmatprep.mubr.msk.f32.mxu1 %vm736_vm0, %v735_v0 }
 0x12b   :  { %v203_v48 = vmax.f32 %v198_v46, 0.0 }
 0x12d   :  { %517 = vmatmul.mubr.f32.gmra.mxu1 %v203_v48 }
 0x1e5   :  { %v293_v50 = vpop.f32.mrf.mxu1 }
 0x1e6   :  { %v294_v51 = vadd.f32 %v398_v49, %v293_v50 }
 0x1e7   :  { %v512_v52 = vpop.f32.mrf.mxu1 }
 0x1e8   :  { %307 = vst [vmem:[#allocation11] sm:$0xff] %v294_v51 }
 0x1e9   :  { %v298_v53 = vpop.f32.mrf.mxu1 }
 0x1ea   :  { %v299_v54 = vadd.f32 %v398_v49, %v298_v53 }
 0x1eb   :  { %v515_v55 = vpop.f32.mrf.mxu1 }
 0x1ec   :  { %308 = vst [vmem:[#allocation12] sm:$0xff] %v299_v54  ;;  %v310_v56 = vsub.f32 %v294_v51, %v299_v54 }
 0x1ed   :  { %v303_v57 = vpop.f32.mrf.mxu1 }
 0x1ee   :  { %v304_v58 = vadd.f32 %v398_v49, %v303_v57  ;;  %v311_v59 = vadd.f32 1e-06, %v310_v56 }
 0x1ef   :  { %v518_v60 = vpop.f32.mrf.mxu1 }
 0x1f0   :  { %309 = vst [vmem:[#allocation14] sm:$0xff] %v304_v58  ;;  %v314_v61 = vmul.f32 %v311_v59, %v311_v59  ;;  %v312_v62 = vsub.f32 %v294_v51, %v304_v58 }
 0x1f2   :  { %315 = vadd.xlane.f32.xlu0 %v314_v61  ;;  %v313_v63 = vadd.f32 1e-06, %v312_v62 }
 0x1f4   :  { %v324_v0 = vmul.f32 %v313_v63, %v313_v63 }
 0x1f6   :  { %325 = vadd.xlane.f32.xlu0 %v324_v0 }
 0x1f7   :  { %647 = shalt.err (!%p644_p1)
}
 0x1f8   :  { %356 = dma.vmem_to_hbm [thread:$0]  %s354_s18, 128, %s890_s8, [#allocation13]  }
 0x1f9   :  { %s656_s26 = scalar_lea.vmem %s344_s20, 128  ;;  %p661_p3 = scmp.lt.s32.totalorder %s344_s20, %s344_s20 }
 0x1fa   :  { %p657_p2 = scmp.ne.s32.totalorder %s344_s20, %s656_s26  ;;  %p662_p4 = scmp.lt.s32.totalorder %s656_s26, %s656_s26 }
 0x1fc   :  { %p663_p5 = por %p662_p4, %p661_p3 }
 0x1fe   :  { %p664_p6 = pnand %p663_p5, %p657_p2 }
 0x200   :  { %667 = shalt.err (!%p664_p6)
}
 0x201   :  { %346 = dma.vmem_to_hbm [thread:$0]  %s344_s20, 128, %s889_s7, [#allocation4]  }
 0x202   :  { %s739_s28 = smov [#allocation14]  }
 0x203   :  { %s363_s29 = sshll.u32 %s739_s28, 4  ;;  %s364_s29 = int_to_ptr.vmem [resolvable:$true] %s363_s29 }
 0x204   :  { %s676_s30 = scalar_lea.vmem %s364_s29, 128  ;;  %p681_p8 = scmp.lt.s32.totalorder %s364_s29, %s364_s29 }
 0x205   :  { %p677_p7 = scmp.ne.s32.totalorder %s364_s29, %s676_s30  ;;  %p682_p9 = scmp.lt.s32.totalorder %s676_s30, %s676_s30 }
 0x207   :  { %p683_p10 = por %p682_p9, %p681_p8 }
 0x209   :  { %p684_p11 = pnand %p683_p10, %p677_p7 }
 0x20b   :  { %687 = shalt.err (!%p684_p11)
}
 0x20c   :  { %366 = dma.vmem_to_hbm [thread:$0]  %s364_s29, 128, %s891_s9, [#allocation13]  }
 0x20d   :  { %s740_s7 = smov [#allocation15]  }
 0x20e   :  { %s372_s3 = sshll.u32 %s740_s7, 4  ;;  %s373_s3 = int_to_ptr.vmem [resolvable:$true] %s372_s3 }
 0x20f   :  { %s696_s9 = scalar_lea.vmem %s373_s3, 256  ;;  %p701_p13 = scmp.lt.s32.totalorder %s373_s3, %s373_s3 }
 0x210   :  { %p697_p12 = scmp.ne.s32.totalorder %s373_s3, %s696_s9  ;;  %p702_p0 = scmp.lt.s32.totalorder %s696_s9, %s696_s9 }
 0x212   :  { %p703_p1 = por %p702_p0, %p701_p13 }
 0x214   :  { %p704_p2 = pnand %p703_p1, %p697_p12 }
 0x27b   :  { %v316_v1 = vpop.xlane.xlu0 %315 }
 0x27c   :  { %532 = vrsqrt.f32 %v316_v1  ;;  %vm319_vm1 = vcmp.eq.f32.partialorder %v316_v1, inf  ;;  %v322_v5 = vand.u32 2147483648, %v316_v1  ;;  %vm321_vm2 = vcmp.eq.f32.partialorder %v316_v1, 0.0 }
 0x27f   :  { %v326_v2 = vpop.xlane.xlu0 %325 }
 0x280   :  { %534 = vrsqrt.f32 %v326_v2  ;;  %vm329_vm3 = vcmp.eq.f32.partialorder %v326_v2, inf  ;;  %v332_v10 = vand.u32 2147483648, %v326_v2  ;;  %vm331_vm4 = vcmp.eq.f32.partialorder %v326_v2, 0.0 }
 0x289   :  { %v533_v3 = vpop.eup %532 }
 0x28a   :  { %v318_v4 = vmul.f32 %v533_v3, %v316_v1 }
 0x28c   :  { %v320_v6 = vsel %vm319_vm1, %v316_v1, %v318_v4 }
 0x28d   :  { %v535_v7 = vpop.eup %534  ;;  %v323_v8 = vsel %vm321_vm2, %v322_v5, %v320_v6 }
 0x28e   :  { %v328_v9 = vmul.f32 %v535_v7, %v326_v2  ;;  %334 = vst [vmem:[#allocation15] sm:$0xff] %v323_v8 }
 0x290   :  { %v330_v11 = vsel %vm329_vm3, %v326_v2, %v328_v9 }
 0x291   :  { %v333_v12 = vsel %vm331_vm4, %v332_v10, %v330_v11 }
 0x292   :  { %336 = vst [vmem:[#allocation15 + $0x8] sm:$0xff] %v333_v12 }
 0x293   :  { %707 = shalt.err (!%p704_p2)
}
 0x294   :  { %378 = dma.vmem_to_hbm [thread:$0]  %s373_s3, 256, %s892_s10, [#allocation16], %s730_s21, %s730_s21, %s731_s22  }
 0x295   :  { %722 = dma.done.wait [#allocation4], 128  }
 0x296   :  { %723 = vsyncadd [#allocation4], 4294967168 }
 0x297   :  { %724 = dma.done.wait [#allocation13], 256  }
 0x298   :  { %725 = vsyncadd [#allocation13], 4294967040 }
 0x299   :  { %726 = dma.done.wait [#allocation16], 256  }
 0x29a   :  { %727 = vsyncadd [#allocation16], 4294967040 }
 0x29b   :  { %391 = vsyncpa [#allocation3], 1 }
 0x29c   :  { %392 = vsyncpa [#allocation6], 1 }
 0x29d   :  { %393 = vsyncpa [#allocation9], 1 }
 0x29e   :  { %394 = vsyncpa [#allocation4], 1 }
 0x29f   :  { %395 = vsyncpa [#allocation13], 1 }
 0x2a0   :  { %396 = vsyncpa [#allocation16], 1 }

</bundles_post_ra>
